<compile_context>
chip_gen: v7x
topology: tpu7x:2x2x1
jax: 0.10.0
libtpu: 0.0.40
codegen_flags: <defaults>
</compile_context>

<pallas_src>
import functools

import numpy as np
import jax
import jax.numpy as jnp
from jax.experimental import pallas as pl
from jax.experimental.pallas import tpu as pltpu


# ----------------------------------------------------------------------------
# Config / hardware awareness
# ----------------------------------------------------------------------------
_MM_DTYPE = jnp.bfloat16        # MXU operand dtype (f32 accumulation everywhere)
_TILE_ROWS_MAX = 4096           # big tiles amortize the ~0.35us per-grid-step cost


def _round_up(x, m):
    return ((x + m - 1) // m) * m


@functools.lru_cache(maxsize=1)
def _vmem_limit():
    """Generation-aware scoped-VMEM budget.

    v5e/v6e: 128 MiB physical per core -> 96 MiB budget (lets row tiles grow).
    v7x:     64 MiB physical per core  -> 48 MiB budget (keeps double-buffering).
    unknown: conservative 32 MiB that compiles everywhere.
    """
    kind = ""
    try:
        kind = jax.devices()[0].device_kind.lower()
    except Exception:
        pass
    if "v7" in kind or "7x" in kind:
        return 48 * 1024 * 1024
    if "v5" in kind or "v6" in kind:
        return 96 * 1024 * 1024
    if "v4" in kind:
        return 64 * 1024 * 1024
    return 32 * 1024 * 1024


def _apply_act(y, act):
    if act == "relu":
        return jnp.maximum(y, 0.0)
    if act == "tanh":
        return jnp.tanh(y)
    if act == "sigmoid":
        return jax.nn.sigmoid(y)
    if act == "none":
        return y
    raise ValueError(act)


def _mm(a, b):
    """bf16-operand matmul with f32 accumulation (same recipe in kernels/ref)."""
    return jnp.dot(a.astype(_MM_DTYPE), b.astype(_MM_DTYPE),
                   preferred_element_type=jnp.float32)


# ----------------------------------------------------------------------------
# Kernel 1: row-tiled linear (batched center projection, batched classify)
#           output lanes padded to a multiple of 128 -> unmasked stores.
# ----------------------------------------------------------------------------
def _linear_kernel(*refs, act, has_bias):
    if has_bias:
        x_ref, w_ref, b_ref, o_ref = refs
    else:
        x_ref, w_ref, o_ref = refs
    y = _mm(x_ref[...], w_ref[...])
    if has_bias:
        y = y + b_ref[...]
    o_ref[...] = _apply_act(y, act)


def pallas_linear(x, w, b=None, act="none"):
    M, K = x.shape
    K2, N = w.shape
    assert K == K2
    if M == 0:
        return jnp.zeros((0, N), jnp.float32)

    n_pad = _round_up(N, 128)                       # lane-dense output stores
    if n_pad != N:
        w = jnp.pad(w, ((0, 0), (0, n_pad - N)))
        if b is not None:
            b = jnp.pad(b, ((0, n_pad - N),))

    tile_m = min(_TILE_ROWS_MAX, _round_up(M, 16))  # 16: bf16 sublane packing
    grid = (pl.cdiv(M, tile_m),)
    has_bias = b is not None

    in_specs = [pl.BlockSpec((tile_m, K), lambda i: (i, 0)),
                pl.BlockSpec((K, n_pad), lambda i: (0, 0))]      # weight resident
    args = [x, w]
    if has_bias:
        in_specs.append(pl.BlockSpec((1, n_pad), lambda i: (0, 0)))  # bias resident
        args.append(b.reshape(1, n_pad))

    kern = functools.partial(_linear_kernel, act=act, has_bias=has_bias)
    out = pl.pallas_call(
        kern,
        out_shape=jax.ShapeDtypeStruct((M, n_pad), jnp.float32),
        grid=grid,
        in_specs=in_specs,
        out_specs=pl.BlockSpec((tile_m, n_pad), lambda i: (i, 0)),
        compiler_params=pltpu.CompilerParams(
            dimension_semantics=("parallel",),      # row tiles split over TCs
            vmem_limit_bytes=_vmem_limit()),
    )(*args)
    return out if n_pad == N else out[:, :N]


# ----------------------------------------------------------------------------
# Kernel 2: fused metapath MLP + segment aggregation (sum / mean per node)
#           grid = (partials, row tiles); partial axis is "parallel" so v7x's
#           second TensorCore shares the work; partials summed in JAX.
# ----------------------------------------------------------------------------
def _mlp_segsum_kernel(x_ref, seg_ref, *rest, acts, num_nodes):
    out_ref = rest[-1]
    wb = rest[:-1]

    @pl.when(pl.program_id(1) == 0)
    def _init():
        out_ref[...] = jnp.zeros_like(out_ref)

    # whole MLP chain in VMEM (no per-layer HBM round trips); x is already bf16
    # and explicitly zero-padded, so no row masking is needed here.
    h = x_ref[...]
    for li, act in enumerate(acts):
        w = wb[2 * li][...]
        bvec = wb[2 * li + 1][...]
        h = _apply_act(_mm(h, w) + bvec, act)

    # per-node aggregation: bf16 one-hot built in-kernel from segment ids.
    # Padding rows carry seg id == num_nodes -> never match -> contribute 0.
    tile_m = x_ref.shape[0]
    node = jax.lax.broadcasted_iota(jnp.int32, (num_nodes, tile_m), 0)
    onehot = (node == seg_ref[...]).astype(_MM_DTYPE)
    acc = jnp.dot(onehot, h.astype(_MM_DTYPE), preferred_element_type=jnp.float32)
    out_ref[...] += acc[None]


@functools.lru_cache(maxsize=None)
def _segment_meta(rows, t_pad):
    """Segment-id row vector (1, t_pad) int32; padding id == num_nodes."""
    num_nodes = len(rows)
    seg = np.full((1, t_pad), num_nodes, np.int32)
    off = 0
    for i, r in enumerate(rows):
        seg[0, off:off + r] = i
        off += r
    return seg


def _segsum_tiling(t_rows, num_nodes, in_dim, widths):
    """Pick a row tile that fits the generation's VMEM (one-hot included)."""
    vmem = _vmem_limit()
    max_w = max((in_dim,) + tuple(widths))
    # rough per-row bytes: bf16 x (double buffered) + f32/bf16 h intermediates
    # + bf16 one-hot + int32 compare temps against the segment-id vector
    per_row = 2 * in_dim * 2 + 6 * max_w + 6 * num_nodes + 16
    cap = min(_TILE_ROWS_MAX, max(128, (vmem // 2) // per_row))
    single = _round_up(t_rows, 16)
    if single <= cap:
        return single, 1                           # one tile covers everything
    tile_m = max(128, (cap // 128) * 128)          # 128-multiple keeps the
    return tile_m, -(-t_rows // tile_m)            # (1, tile_m) seg block legal


def pallas_metapath_mlp_segsum(x, layers, rows, mean_test):
    T, in_dim = x.shape
    rows = [int(r) for r in rows]
    num_nodes = len(rows)
    out_dim = layers[-1][0].shape[1]
    if T == 0:                                     # empty-metapath guard
        return jnp.zeros((num_nodes, out_dim), jnp.float32)
    assert sum(rows) == T, "rows_dict must describe contiguous, ordered segments"

    widths = tuple(w.shape[1] for (w, _b, _a) in layers)
    tile_m, n_tiles = _segsum_tiling(T, num_nodes, in_dim, widths)
    num_partials = 2 if n_tiles >= 2 else 1        # v7x: one partial per core
    tiles_pp = -(-n_tiles // num_partials)
    t_pad = num_partials * tiles_pp * tile_m

    x_p = x.astype(_MM_DTYPE)                      # bf16 in HBM: half the read bytes
    if t_pad != T:
        x_p = jnp.pad(x_p, ((0, t_pad - T), (0, 0)))
    seg = jnp.asarray(_segment_meta(tuple(rows), t_pad))

    acts = tuple(a for (_w, _b, a) in layers)
    args = [x_p, seg]
    in_specs = [pl.BlockSpec((tile_m, in_dim), lambda p, i: (p * tiles_pp + i, 0)),
                pl.BlockSpec((1, tile_m), lambda p, i: (0, p * tiles_pp + i))]
    for (w, bvec, _a) in layers:
        kin, kout = w.shape
        args += [w, bvec.reshape(1, kout)]
        in_specs += [pl.BlockSpec((kin, kout), lambda p, i: (0, 0)),
                     pl.BlockSpec((1, kout), lambda p, i: (0, 0))]

    kern = functools.partial(_mlp_segsum_kernel, acts=acts, num_nodes=num_nodes)
    partials = pl.pallas_call(
        kern,
        out_shape=jax.ShapeDtypeStruct((num_partials, num_nodes, out_dim),
                                       jnp.float32),
        grid=(num_partials, tiles_pp),
        in_specs=in_specs,
        out_specs=pl.BlockSpec((1, num_nodes, out_dim), lambda p, i: (p, 0, 0)),
        compiler_params=pltpu.CompilerParams(
            dimension_semantics=("parallel", "arbitrary"),
            vmem_limit_bytes=_vmem_limit()),
    )(*args)
    # TODO(synk): for very large num_nodes the (num_nodes, tile_m) one-hot and
    # resident accumulator no longer fit v7x's 64 MiB VMEM; switch to a
    # scalar-prefetched node-window one-hot that also tiles the node axis.
    # TODO(synk): metapaths of a type sharing layer widths could have their
    # layer-0 weights packed along N (multiple of 128) to fill the 256-wide MXU.

    out = jnp.sum(partials, axis=0)
    if mean_test:
        scale = jnp.asarray([[1.0 / r if r > 0 else 0.0] for r in rows], jnp.float32)
        out = out * scale
    return out


# ----------------------------------------------------------------------------
# Kernel 3: batched attention scores for ALL metapaths of one node type.
#   score_p = mean_rows( leakyrelu_0.1( tanh(c) . a  +  tanh(v_p) . b ) )
#   with [a; b] = W1 @ w2 folded on the host (exact: no nonlinearity between).
# ----------------------------------------------------------------------------
def _attn_batched_kernel(c_ref, inj_ref, ab_ref, o_ref, *, num_rows, num_mp):
    i = pl.program_id(0)

    @pl.when(i == 0)
    def _init():
        o_ref[...] = jnp.zeros_like(o_ref)

    tm = c_ref.shape[0]
    ab = ab_ref[...]                                           # (2, E) f32
    row = jax.lax.broadcasted_iota(jnp.int32, (tm, 1), 0) + i * tm
    valid = row < num_rows
    u = jnp.sum(jnp.tanh(c_ref[...]) * ab[0:1, :], axis=-1, keepdims=True)  # (tm,1)
    inv_n = 1.0 / num_rows
    for k in range(num_mp):                                    # small static unroll
        tk = jnp.sum(jnp.tanh(inj_ref[:, k, :]) * ab[1:2, :],
                     axis=-1, keepdims=True)                   # (tm, 1)
        s = u + tk
        s = jnp.where(s > 0, s, 0.1 * s)                       # LeakyReLU(0.1)
        s = jnp.where(valid, s, 0.0)
        o_ref[:, k:k + 1] += jnp.sum(s, keepdims=True) * inv_n


def pallas_attn_scores(center, inj_stack, w1, w2):
    """center: (M, E) f32, inj_stack: (M, P, E) f32 -> (P,) scores."""
    M, E = center.shape
    P = inj_stack.shape[1]
    ab = jnp.matmul(w1, w2, precision=jax.lax.Precision.HIGHEST).reshape(2, E)
    tile_m = min(_TILE_ROWS_MAX, _round_up(M, 8))
    kern = functools.partial(_attn_batched_kernel, num_rows=M, num_mp=P)
    out = pl.pallas_call(
        kern,
        out_shape=jax.ShapeDtypeStruct((1, P), jnp.float32),
        grid=(pl.cdiv(M, tile_m),),
        in_specs=[pl.BlockSpec((tile_m, E), lambda i: (i, 0)),
                  pl.BlockSpec((tile_m, P, E), lambda i: (i, 0, 0)),
                  pl.BlockSpec((2, E), lambda i: (0, 0))],
        out_specs=pl.BlockSpec((1, P), lambda i: (0, 0)),
        compiler_params=pltpu.CompilerParams(
            dimension_semantics=("arbitrary",),     # resident score accumulator
            vmem_limit_bytes=_vmem_limit()),
    )(center, inj_stack, ab)
    return out[0]


# ----------------------------------------------------------------------------
# Pure-JAX reference (same math recipe, no Pallas) for correctness checking
# ----------------------------------------------------------------------------
def ref_linear(x, w, b=None, act="none"):
    y = _mm(x, w)
    if b is not None:
        y = y + b.reshape(1, -1)
    return _apply_act(y, act)


def ref_metapath_mlp_segsum(x, layers, rows, mean_test):
    num_nodes = len(rows)
    out_dim = layers[-1][0].shape[1]
    if x.shape[0] == 0:
        return jnp.zeros((num_nodes, out_dim), jnp.float32)
    h = x
    for (w, b, act) in layers:
        h = _apply_act(_mm(h, w) + b.reshape(1, -1), act)
    seg = np.full((x.shape[0],), num_nodes, np.int32)
    off = 0
    for i, r in enumerate(rows):
        seg[off:off + r] = i
        off += r
    onehot = (np.arange(num_nodes)[:, None] == seg[None, :]).astype(np.float32)
    out = _mm(jnp.asarray(onehot), h)
    if mean_test:
        scale = np.array([[1.0 / r if r > 0 else 0.0] for r in rows], np.float32)
        out = out * jnp.asarray(scale)
    return out


def ref_attn_score(center, inj, w1, w2):
    E = center.shape[1]
    h = _mm(jnp.tanh(center), w1[:E, :]) + _mm(jnp.tanh(inj), w1[E:, :])
    s = jnp.sum(h * w2.reshape(1, -1), axis=-1, keepdims=True)
    s = jnp.where(s > 0, s, 0.1 * s)
    return jnp.mean(s)


# ----------------------------------------------------------------------------
# Parameter init (deterministic, shapes dictated by GraphMSE.__init__)
# ----------------------------------------------------------------------------
class KeyGen:
    def __init__(self, seed=0):
        self._key = jax.random.PRNGKey(seed)

    def __call__(self):
        self._key, sub = jax.random.split(self._key)
        return sub


def _init_linear(kg, fan_in, fan_out):
    wb = float(np.sqrt(6.0 / fan_in))
    bb = float(1.0 / np.sqrt(fan_in))
    w = jax.random.uniform(kg(), (fan_in, fan_out), jnp.float32, -wb, wb)
    b = jax.random.uniform(kg(), (fan_out,), jnp.float32, -bb, bb)
    return w, b


def init_graphmse_params(metapath_list, input_dim, pre_embed_dim, select_dim,
                         mlp_settings, seed=0):
    assert mlp_settings["activation"] in ("sigmoid", "relu", "tanh")
    kg = KeyGen(seed)
    act = mlp_settings["activation"]
    layer_list = mlp_settings["layer_list"]
    params = {"type_weight": {}, "metapath_mlp": {}, "attn": {},
              "metapath2index": {}}
    for t in metapath_list:
        tw_bound = float(np.sqrt(6.0 / input_dim))
        params["type_weight"][t] = jax.random.uniform(
            kg(), (input_dim, pre_embed_dim), jnp.float32, -tw_bound, tw_bound)
        params["metapath_mlp"][t] = {}
        params["metapath2index"][t] = {}
        for idx, mp in enumerate(metapath_list[t]):
            params["metapath2index"][t][mp] = idx
            in_dim = (len(mp) - 1) * input_dim          # endnode_test=False
            layers = []
            if len(layer_list) == 0:
                w, b = _init_linear(kg, in_dim, pre_embed_dim)
                layers.append((w, b, "none"))
            else:
                w, b = _init_linear(kg, in_dim, layer_list[0])
                layers.append((w, b, act))
                for i in range(len(layer_list) - 1):
                    # TODO(synk): Dropout layers from mlp_settings['dropout_list']
                    # are treated as identity (eval-mode semantics).
                    w, b = _init_linear(kg, layer_list[i], layer_list[i + 1])
                    layers.append((w, b, act))
                w, b = _init_linear(kg, layer_list[-1], pre_embed_dim)
                layers.append((w, b, "none"))
            params["metapath_mlp"][t][mp] = layers
        e2 = 2 * pre_embed_dim
        ab = float(np.sqrt(6.0 / e2))
        params["attn"][t] = (
            jax.random.uniform(kg(), (e2, e2), jnp.float32, -ab, ab),
            jax.random.uniform(kg(), (e2, 1), jnp.float32, -ab, ab),
        )
    params["classify"] = _init_linear(kg, pre_embed_dim, select_dim)
    return params


# ----------------------------------------------------------------------------
# Forward pass (mirrors GraphMSE.forward; endnode_test=False)
# ----------------------------------------------------------------------------
def graphmse_forward(params, rows_dict, feature_dict, start_select=False,
                     mean_test=False, use_pallas=True):
    # split features into center (len==1 metapath) and metapath features
    center_feat, mp_feats = {}, {}
    for t in feature_dict:
        mp_feats[t] = {}
        for mp, feat in feature_dict[t].items():
            if len(mp) == 1:
                center_feat[t] = feat
            else:
                mp_feats[t][mp] = feat

    # center-node projections: ONE batched, lane-dense launch across all types
    center_node = {}
    c_types = [t for t in feature_dict if t in center_feat]
    if use_pallas and c_types:
        E = params["type_weight"][c_types[0]].shape[1]
        w_all = jnp.concatenate([params["type_weight"][t] for t in c_types], axis=1)
        x_all = jnp.concatenate([center_feat[t] for t in c_types],
                                axis=0).astype(_MM_DTYPE)
        y_all = pallas_linear(x_all, w_all)           # N padded to 128 internally
        off = 0
        for ti, t in enumerate(c_types):
            n = center_feat[t].shape[0]
            center_node[t] = y_all[off:off + n, ti * E:(ti + 1) * E]
            off += n
    else:
        for t in c_types:
            center_node[t] = ref_linear(center_feat[t], params["type_weight"][t])

    injective, GAN_input, classify_in = {}, {}, {}
    for t in feature_dict:
        injective[t] = {}
        for mp, feat in mp_feats[t].items():
            if use_pallas:
                injective[t][mp] = pallas_metapath_mlp_segsum(
                    feat, params["metapath_mlp"][t][mp], rows_dict[t][mp], mean_test)
            else:
                injective[t][mp] = ref_metapath_mlp_segsum(
                    feat, params["metapath_mlp"][t][mp], rows_dict[t][mp], mean_test)
        # torch aliases GAN_input[type] = injective[type]; later scaling stays
        # visible through the shared dict, matching the module's semantics.
        GAN_input[t] = injective[t]

        if start_select and injective[t]:
            mp2i = params["metapath2index"][t]
            w1, w2 = params["attn"][t]
            present = list(injective[t].keys())
            scores = [jnp.float32(0.0)] * len(mp2i)
            if use_pallas:
                inj_stack = jnp.stack([injective[t][mp] for mp in present], axis=1)
                svec = pallas_attn_scores(center_node[t], inj_stack, w1, w2)
                for k, mp in enumerate(present):
                    scores[mp2i[mp]] = svec[k]
            else:
                for mp in present:
                    scores[mp2i[mp]] = ref_attn_score(center_node[t],
                                                      injective[t][mp], w1, w2)
            w_vec = jax.nn.softmax(jnp.stack(scores))
            for mp in present:
                injective[t][mp] = injective[t][mp] * w_vec[mp2i[mp]]

        embed = jnp.mean(jnp.stack(list(injective[t].values()), axis=2), axis=2)
        classify_in[t] = center_node[t] + embed

    # classify layer: batched across all node types in ONE lane-dense launch
    wc, bc = params["classify"]
    order = list(classify_in.keys())
    big = jnp.concatenate([classify_in[t] for t in order], axis=0)
    if use_pallas:
        big_out = pallas_linear(big.astype(_MM_DTYPE), wc, bc)
    else:
        big_out = ref_linear(big, wc, bc)

    pre_embed = {}
    off = 0
    for t in order:
        n = classify_in[t].shape[0]
        pre_embed[t] = big_out[off:off + n]
        off += n
    return pre_embed, GAN_input


# ----------------------------------------------------------------------------
if __name__ == "__main__":
    input_dim, pre_embed_dim, select_dim = 16, 32, 4
    mlp_settings = {"layer_list": [32], "dropout_list": [0.1],
                    "activation": "relu"}
    # "APP" has zero rows everywhere -> exercises the empty-metapath guard.
    metapath_list = {"A": ["AP", "APA", "APP"], "B": ["BP"]}
    rows_dict = {"A": {"AP": [2, 0, 3, 1, 2, 0, 1, 3],
                       "APA": [1, 2, 0, 2, 1, 1, 2, 0],
                       "APP": [0, 0, 0, 0, 0, 0, 0, 0]},
                 "B": {"BP": [0, 2, 1, 3, 0, 2]}}
    n_nodes = {"A": 8, "B": 6}

    params = init_graphmse_params(metapath_list, input_dim, pre_embed_dim,
                                  select_dim, mlp_settings, seed=0)

    dkg = KeyGen(1)
    feature_dict = {}
    for t in metapath_list:
        feature_dict[t] = {t: jax.random.normal(dkg(), (n_nodes[t], input_dim),
                                                jnp.float32)}
        for mp in metapath_list[t]:
            total = int(sum(rows_dict[t][mp]))
            feature_dict[t][mp] = jax.random.normal(
                dkg(), (total, (len(mp) - 1) * input_dim), jnp.float32)

    # Tolerance accounts for bf16 MXU operands (f32 accumulation) plus the
    # exact-algebra w2-folding in the attention scorer; structural bugs would
    # show up as O(1) errors.
    for start_select in (False, True):
        pe, gi = graphmse_forward(params, rows_dict, feature_dict,
                                  start_select=start_select, use_pallas=True)
        pe_r, gi_r = graphmse_forward(params, rows_dict, feature_dict,
                                      start_select=start_select, use_pallas=False)
        for t in pe:
            jax.block_until_ready(pe[t])
            np.testing.assert_allclose(np.asarray(pe[t]), np.asarray(pe_r[t]),
                                       atol=5e-2, rtol=5e-2)
            for mp in gi[t]:
                jax.block_until_ready(gi[t][mp])
                np.testing.assert_allclose(np.asarray(gi[t][mp]),
                                           np.asarray(gi_r[t][mp]),
                                           atol=5e-2, rtol=5e-2)
    print("KERNEL_OK")
</pallas_src>

<mosaic_0001>
module attributes {stable_mosaic.version = 11 : i64} {
  func.func @_linear_kernel(%arg0: i32, %arg1: memref<16x16xbf16, #tpu.memory_space<vmem>>, %arg2: memref<16x128xf32, #tpu.memory_space<vmem>>, %arg3: memref<16x128xf32, #tpu.memory_space<vmem>>) attributes {dimension_semantics = [#tpu.dimension_semantics<parallel>], iteration_bounds = array<i64: 1>, scalar_prefetch = 0 : i64, scratch_operands = 0 : i64, tpu.core_type = #tpu.core_type<tc>, window_params = [{transform_indices = @transform_0, window_bounds = array<i64: 16, 16>}, {pipeline_mode = #tpu.pipeline_mode<synchronous>, transform_indices = @transform_1, window_bounds = array<i64: 16, 128>}, {transform_indices = @transform_2, window_bounds = array<i64: 16, 128>}]} {
    %c0 = arith.constant 0 : index
    %c0_0 = arith.constant 0 : index
    %0 = vector.load %arg1[%c0, %c0_0] : memref<16x16xbf16, #tpu.memory_space<vmem>>, vector<16x16xbf16>
    %c0_1 = arith.constant 0 : index
    %c0_2 = arith.constant 0 : index
    %1 = vector.load %arg2[%c0_1, %c0_2] : memref<16x128xf32, #tpu.memory_space<vmem>>, vector<16x128xf32>
    %2 = arith.truncf %1 : vector<16x128xf32> to vector<16x128xbf16>
    %cst = arith.constant dense<0.000000e+00> : vector<16x128xf32>
    %3 = tpu.matmul %0, %2, %cst {dimension_numbers = #tpu.dot_dimension_numbers<[1], [0], [0], [1], [0, 0, 1, 1], [], []>} : vector<16x16xbf16>, vector<16x128xbf16>, vector<16x128xf32> -> vector<16x128xf32>
    %c0_3 = arith.constant 0 : index
    %c0_4 = arith.constant 0 : index
    %4 = vector.load %arg3[%c0_3, %c0_4] : memref<16x128xf32, #tpu.memory_space<vmem>>, vector<16x128xf32>
    tpu.vector_store %arg3[%c0_3, %c0_4], %3 {strides = array<i32>} : memref<16x128xf32, #tpu.memory_space<vmem>>, vector<16x128xf32>,
    return
  }
  func.func @transform_0(%arg0: i32) -> (i32, i32) {
    %c0_i32 = arith.constant 0 : i32
    %c0_i32_0 = arith.constant 0 : i32
    return %arg0, %c0_i32 : i32, i32
  }
  func.func @transform_1(%arg0: i32) -> (i32, i32) {
    %c0_i32 = arith.constant 0 : i32
    %c0_i32_0 = arith.constant 0 : i32
    %c0_i32_1 = arith.constant 0 : i32
    return %c0_i32, %c0_i32_0 : i32, i32
  }
  func.func @transform_2(%arg0: i32) -> (i32, i32) {
    %c0_i32 = arith.constant 0 : i32
    %c0_i32_0 = arith.constant 0 : i32
    return %arg0, %c0_i32 : i32, i32
  }
}

</mosaic_0001>

<bundles_post_ra>
// kernel: tpu_custom_call.1
= control target key start
LH: loop header
LB: loop body
LE: loop exit
PB: predicated region body
PF: predicated region fallthrough
CT: control target
= control target key end

     0   :  { %7 = vsyncpa [#allocation3], 0  ;;  %s274_s0 = inlined_call_operand.hbm [shape: bf16[14,16], index: 0, kind: input, shape index: {}]   ;;  %s275_s1 = inlined_call_operand.hbm [shape: f32[16,128], index: 1, kind: input, shape index: {}]   ;;  %s276_s2 = inlined_call_operand.hbm [shape: f32[14,128], index: 2, kind: output, shape index: {}]  }
   0x1   :  { %8 = vsyncpa [#allocation6], 0 }
   0x2   :  { %9 = vsyncpa [#allocation4], 0  ;;  %s208_s9 = smov [#allocation2]   ;;  %s136_s13 = scalar_lea.hbm %s274_s0, 128 }
   0x3   :  { %s15_s10 = sshll.u32 %s208_s9, 4  ;;  %p137_p0 = scmp.ne.s32.totalorder %s274_s0, %s136_s13  ;;  %s16_s10 = int_to_ptr.vmem [resolvable:$true] %s15_s10 }
   0x4   :  { %p140_p1 = scmp.lt.u32.totalorder %s136_s13, %s274_s0 }
   0x6   :  { %p142_p2 = pnand %p140_p1, %p137_p0 }
   0x8   :  { %145 = shalt.err (!%p142_p2)
}
   0x9   :  { %s146_s18 = scalar_lea.vmem %s16_s10, 128  ;;  %p151_p4 = scmp.lt.s32.totalorder %s16_s10, %s16_s10 }
   0xa   :  { %p147_p3 = scmp.ne.s32.totalorder %s16_s10, %s146_s18  ;;  %p152_p5 = scmp.lt.s32.totalorder %s146_s18, %s146_s18 }
   0xc   :  { %p153_p6 = por %p152_p5, %p151_p4 }
   0xe   :  { %p154_p7 = pnand %p153_p6, %p147_p3 }
  0x10   :  { %157 = shalt.err (!%p154_p7)
}
  0x11   :  { %s209_s19 = smov 64   ;;  %s210_s20 = smov 4  }
  0x12   :  { %21 = dma.hbm_to_vmem [thread:$0]  %s274_s0, 128, %s16_s10, [#allocation3], %s209_s19, %s209_s19, %s210_s20  }
  0x13   :  { %s211_s23 = smov [#allocation5]   ;;  %s158_s27 = scalar_lea.hbm %s275_s1, 256 }
  0x14   :  { %s27_s24 = sshll.u32 %s211_s23, 4  ;;  %p159_p8 = scmp.ne.s32.totalorder %s275_s1, %s158_s27  ;;  %s28_s24 = int_to_ptr.vmem [resolvable:$true] %s27_s24 }
  0x15   :  { %p162_p9 = scmp.lt.u32.totalorder %s158_s27, %s275_s1 }
  0x17   :  { %p164_p10 = pnand %p162_p9, %p159_p8 }
  0x19   :  { %167 = shalt.err (!%p164_p10)
}
  0x1a   :  { %s168_s4 = scalar_lea.vmem %s28_s24, 256  ;;  %p173_p12 = scmp.lt.s32.totalorder %s28_s24, %s28_s24 }
  0x1b   :  { %p169_p11 = scmp.ne.s32.totalorder %s28_s24, %s168_s4  ;;  %p174_p13 = scmp.lt.s32.totalorder %s168_s4, %s168_s4 }
  0x1d   :  { %p175_p0 = por %p174_p13, %p173_p12 }
  0x1f   :  { %p176_p1 = pnand %p175_p0, %p169_p11 }
  0x21   :  { %179 = shalt.err (!%p176_p1)
}
  0x22   :  { %s212_s0 = smov 128   ;;  %s213_s5 = smov 8  }
  0x23   :  { %33 = dma.hbm_to_vmem [thread:$0]  %s275_s1, 256, %s28_s24, [#allocation6], %s212_s0, %s212_s0, %s213_s5  }
  0x24   :  { %202 = dma.done.wait [#allocation3], 128  }
  0x25   :  { %203 = vsyncadd [#allocation3], 4294967168 }
  0x26   :  { %204 = dma.done.wait [#allocation6], 256  }
  0x27   :  { %205 = vsyncadd [#allocation6], 4294967040  ;;  %v214_v0 = vmov 0.0   ;;  %vm215_vm0 = vmmov 0   ;;  %v43_v1 = vld [vmem:[#allocation5] sm:$0xff]  ;;  %v44_v2 = vld [vmem:[#allocation5 + $0x8] sm:$0xff] }
  0x28   :  { %120 = vmatprep.subr.bf16.mxu0 %v214_v0  ;;  %122 = vmatprep.mubr.msk.bf16.mxu0 %vm215_vm0, %v214_v0  ;;  %v45_v3 = vpack.c.bf16 %v44_v2, %v43_v1  ;;  %v135_v4 = vld [vmem:[#allocation2] sm:$0xff]   ;;  %vm51_vm1 = vcmask 130048   ;;  %s216_s8 = smov [#allocation7]  }
  0x29   :  { %s103_s9 = sshll.u32 %s216_s8, 4  ;;  %s104_s9 = int_to_ptr.vmem [resolvable:$true] %s103_s9 }
  0x2a   :  { %121 = vmatpush3.bf16.msra.mxu0 %v45_v3  ;;  %s180_s1 = scalar_lea.vmem %s104_s9, 256  ;;  %p185_p3 = scmp.lt.s32.totalorder %s104_s9, %s104_s9 }
  0x2b   :  { %p181_p2 = scmp.ne.s32.totalorder %s104_s9, %s180_s1  ;;  %p186_p4 = scmp.lt.s32.totalorder %s180_s1, %s180_s1 }
  0x2d   :  { %123 = vmatmul.mubr.msk.bf16.vlgmr.msra.gmra.mrb[0].mxu0 %vm51_vm1, %v135_v4  ;;  %p187_p5 = por %p186_p4, %p185_p3 }
  0x2f   :  { %p188_p6 = pnand %p187_p5, %p181_p2 }
 0x100   :  { %v89_v5 = vpop.f32.mrb[0].mxu0 }
 0x101   :  { %96 = vst [vmem:[#allocation7] sm:$0xff] %v89_v5  ;;  %v124_v6 = vpop.f32.mrb[1].mxu0 }
 0x102   :  { %v92_v7 = vpop.f32.mrb[2].mxu0 }
 0x103   :  { %97 = vst [vmem:[#allocation7 + $0x8] sm:$0xff] %v92_v7  ;;  %v125_v8 = vpop.f32.mrb[3].mxu0 }
 0x104   :  { %191 = shalt.err (!%p188_p6)
}
 0x105   :  { %s192_s12 = scalar_lea.hbm %s276_s2, 256 }
 0x106   :  { %p193_p7 = scmp.ne.s32.totalorder %s276_s2, %s192_s12  ;;  %p196_p8 = scmp.lt.u32.totalorder %s192_s12, %s276_s2 }
 0x108   :  { %p198_p9 = pnand %p196_p8, %p193_p7 }
 0x10a   :  { %201 = shalt.err (!%p198_p9)
}
 0x10b   :  { %109 = dma.vmem_to_hbm [thread:$0]  %s104_s9, 256, %s276_s2, [#allocation4], %s212_s0, %s212_s0, %s213_s5  }
 0x10c   :  { %206 = dma.done.wait [#allocation4], 256  }
 0x10d   :  { %207 = vsyncadd [#allocation4], 4294967040 }
 0x10e   :  { %113 = vsyncpa [#allocation3], 1 }
 0x10f   :  { %114 = vsyncpa [#allocation6], 1 }
 0x110   :  { %115 = vsyncpa [#allocation4], 1 }

</bundles_post_ra>
